<compile_context>
chip_gen: v6e
topology: v6e:2x2x1
jax: 0.10.0
libtpu: 0.0.40
codegen_flags: <defaults>
</compile_context>

<pallas_src>
import functools

import jax
import jax.numpy as jnp
from jax.experimental import pallas as pl
from jax.experimental.pallas import tpu as pltpu

LANE = 128     # vreg lane width  (last dim alignment)
SUBLANE = 8    # vreg sublane height (second-to-last dim alignment)


def _round_up(n, m):
    return ((n + m - 1) // m) * m


def qnet_kernel(x_ref, w1_ref, b1_ref, w2_ref, b2_ref, q_ref, act_ref, *,
                action_dim):
    # x: (Bp, S) unpadded in S; w1: (S, Hp); w2: (Hp, Ap); biases lane-padded.
    # Both matmuls are single aligned MXU tiles; bias+ReLU are full-vreg VPU ops.
    h = jnp.dot(x_ref[...], w1_ref[...],
                preferred_element_type=jnp.float32,
                precision=jax.lax.Precision.HIGHEST)
    h = jnp.maximum(h + b1_ref[...], 0.0)                       # bias + ReLU
    q = jnp.dot(h, w2_ref[...],
                preferred_element_type=jnp.float32,
                precision=jax.lax.Precision.HIGHEST) + b2_ref[...]
    q_ref[...] = q.astype(q_ref.dtype)

    # Fused greedy-action head (argmax over the valid action lanes only).
    # Implemented with max/compare/min reduces; matches argmax first-occurrence.
    lane = jax.lax.broadcasted_iota(jnp.int32, q.shape, 1)
    valid = lane < action_dim
    q_masked = jnp.where(valid, q, -jnp.inf)
    q_max = jnp.max(q_masked, axis=1, keepdims=True)
    idx = jnp.where(jnp.logical_and(valid, q_masked == q_max),
                    lane, jnp.int32(q.shape[1]))
    act_ref[...] = jnp.min(idx, axis=1, keepdims=True).astype(jnp.int32)


def pad_qnet_params(w1, b1, w2, b2):
    """Zero-pad parameters once (host side) to lane-aligned shapes.

    Only the hidden and action dims are padded to 128 lanes; the contraction
    dim S stays unpadded (so x needs no per-call padding).
      w1: (S, H) -> (S, Hp);  b1: (H,) -> (1, Hp)
      w2: (H, A) -> (Hp, Ap); b2: (A,) -> (1, Ap)
    Zero padding leaves the math on the valid [:B, :A] output slice unchanged
    (relu(0+0)=0 and zero rows/cols of w2 contribute nothing).
    """
    S, H = w1.shape
    A = w2.shape[1]
    Hp, Ap = _round_up(H, LANE), _round_up(A, LANE)
    w1p = jnp.zeros((S, Hp), w1.dtype).at[:, :H].set(w1)
    b1p = jnp.zeros((1, Hp), b1.dtype).at[0, :H].set(b1)
    w2p = jnp.zeros((Hp, Ap), w2.dtype).at[:H, :A].set(w2)
    b2p = jnp.zeros((1, Ap), b2.dtype).at[0, :A].set(b2)
    return w1p, b1p, w2p, b2p


@functools.partial(jax.jit, static_argnames=("action_dim",))
def qnet_forward(x, padded_params, *, action_dim):
    """x: (B, S) float32. padded_params from pad_qnet_params.

    Returns (q_values (B, action_dim), greedy_action (B,) int32).
    """
    w1p, b1p, w2p, b2p = padded_params
    B, S = x.shape
    Bp = _round_up(B, SUBLANE)
    Ap = w2p.shape[1]

    # Pad the batch to 8 sublanes only if needed (no-op for B % 8 == 0).
    if Bp != B:
        x = jnp.zeros((Bp, S), x.dtype).at[:B, :].set(x)

    kernel = functools.partial(qnet_kernel, action_dim=action_dim)

    # Single grid-less invocation; all operands full-block resident in VMEM.
    # TODO(synk): on v7x, add a batch grid axis with dimension_semantics=
    # ("parallel",) only if the training batch grows into the thousands of rows.
    q_p, act_p = pl.pallas_call(
        kernel,
        out_shape=(jax.ShapeDtypeStruct((Bp, Ap), x.dtype),
                   jax.ShapeDtypeStruct((Bp, 1), jnp.int32)),
        in_specs=[pl.BlockSpec(memory_space=pltpu.MemorySpace.VMEM)] * 5,
        out_specs=(pl.BlockSpec(memory_space=pltpu.MemorySpace.VMEM),
                   pl.BlockSpec(memory_space=pltpu.MemorySpace.VMEM)),
    )(x, w1p, b1p, w2p, b2p)

    # Drop the zero padding (cheap slice, fuses under jit).
    return q_p[:B, :action_dim], act_p[:B, 0]


def init_qnet_params(key, state_dim, hidden_dim, action_dim):
    """Deterministic init mimicking nn.Linear's U(-1/sqrt(fan_in), 1/sqrt(fan_in)).

    Weights are returned already transposed to (in, out) for the kernel.
    """
    k1, k2, k3, k4 = jax.random.split(key, 4)
    bound1 = 1.0 / jnp.sqrt(state_dim)
    bound2 = 1.0 / jnp.sqrt(hidden_dim)
    w1 = jax.random.uniform(k1, (state_dim, hidden_dim), jnp.float32,
                            -bound1, bound1)
    b1 = jax.random.uniform(k2, (hidden_dim,), jnp.float32, -bound1, bound1)
    w2 = jax.random.uniform(k3, (hidden_dim, action_dim), jnp.float32,
                            -bound2, bound2)
    b2 = jax.random.uniform(k4, (action_dim,), jnp.float32, -bound2, bound2)
    return w1, b1, w2, b2


if __name__ == "__main__":
    # CartPole-like sizes: state_dim=4, hidden_dim=32, action_dim=2, batch=8.
    batch, state_dim, hidden_dim, action_dim = 8, 4, 32, 2

    key = jax.random.PRNGKey(0)
    kx, kp = jax.random.split(key)
    x = jax.random.normal(kx, (batch, state_dim), jnp.float32)
    w1, b1, w2, b2 = init_qnet_params(kp, state_dim, hidden_dim, action_dim)

    padded = pad_qnet_params(w1, b1, w2, b2)
    q_vals, action = qnet_forward(x, padded, action_dim=action_dim)
    jax.block_until_ready((q_vals, action))

    # Reference check in plain JAX (same math as the PyTorch forward).
    hi = jnp.maximum(
        jnp.dot(x, w1, precision=jax.lax.Precision.HIGHEST) + b1, 0.0)
    ref = jnp.dot(hi, w2, precision=jax.lax.Precision.HIGHEST) + b2
    ref_action = jnp.argmax(ref, axis=1).astype(jnp.int32)

    assert q_vals.shape == (batch, action_dim)
    assert action.shape == (batch,)
    assert jnp.allclose(q_vals, ref, atol=1e-5, rtol=1e-5)
    assert jnp.array_equal(action, ref_action)

    print("KERNEL_OK")
</pallas_src>

<mosaic_0001>
module attributes {stable_mosaic.version = 11 : i64} {
  func.func @qnet_kernel(%arg0: memref<8x4xf32, #tpu.memory_space<vmem>>, %arg1: memref<4x128xf32, #tpu.memory_space<vmem>>, %arg2: memref<1x128xf32, #tpu.memory_space<vmem>>, %arg3: memref<128x128xf32, #tpu.memory_space<vmem>>, %arg4: memref<1x128xf32, #tpu.memory_space<vmem>>, %arg5: memref<8x128xf32, #tpu.memory_space<vmem>>, %arg6: memref<8x1xi32, #tpu.memory_space<vmem>>) attributes {dimension_semantics = [], scalar_prefetch = 0 : i64, scratch_operands = 0 : i64, tpu.core_type = #tpu.core_type<tc>} {
    %c0 = arith.constant 0 : index
    %c0_0 = arith.constant 0 : index
    %0 = vector.load %arg0[%c0, %c0_0] : memref<8x4xf32, #tpu.memory_space<vmem>>, vector<8x4xf32>
    %c0_1 = arith.constant 0 : index
    %c0_2 = arith.constant 0 : index
    %1 = vector.load %arg1[%c0_1, %c0_2] : memref<4x128xf32, #tpu.memory_space<vmem>>, vector<4x128xf32>
    %cst = arith.constant dense<0.000000e+00> : vector<8x128xf32>
    %2 = tpu.matmul %0, %1, %cst {dimension_numbers = #tpu.dot_dimension_numbers<[1], [0], [0], [1], [0, 0, 1, 1], [], []>, precision = #tpu.contract_precision<fp32>} : vector<8x4xf32>, vector<4x128xf32>, vector<8x128xf32> -> vector<8x128xf32>
    %c0_3 = arith.constant 0 : index
    %c0_4 = arith.constant 0 : index
    %3 = vector.load %arg2[%c0_3, %c0_4] : memref<1x128xf32, #tpu.memory_space<vmem>>, vector<1x128xf32>
    %4 = vector.broadcast %3 : vector<1x128xf32> to vector<8x128xf32>
    %5 = arith.addf %2, %4 : vector<8x128xf32>
    %cst_5 = arith.constant 0.000000e+00 : f32
    %6 = vector.broadcast %cst_5 : f32 to vector<8x128xf32>
    %7 = arith.maximumf %5, %6 : vector<8x128xf32>
    %c0_6 = arith.constant 0 : index
    %c0_7 = arith.constant 0 : index
    %8 = vector.load %arg3[%c0_6, %c0_7] : memref<128x128xf32, #tpu.memory_space<vmem>>, vector<128x128xf32>
    %cst_8 = arith.constant dense<0.000000e+00> : vector<8x128xf32>
    %9 = tpu.matmul %7, %8, %cst_8 {dimension_numbers = #tpu.dot_dimension_numbers<[1], [0], [0], [1], [0, 0, 1, 1], [], []>, precision = #tpu.contract_precision<fp32>} : vector<8x128xf32>, vector<128x128xf32>, vector<8x128xf32> -> vector<8x128xf32>
    %c0_9 = arith.constant 0 : index
    %c0_10 = arith.constant 0 : index
    %10 = vector.load %arg4[%c0_9, %c0_10] : memref<1x128xf32, #tpu.memory_space<vmem>>, vector<1x128xf32>
    %11 = vector.broadcast %10 : vector<1x128xf32> to vector<8x128xf32>
    %12 = arith.addf %9, %11 : vector<8x128xf32>
    %c0_11 = arith.constant 0 : index
    %c0_12 = arith.constant 0 : index
    %13 = vector.load %arg5[%c0_11, %c0_12] : memref<8x128xf32, #tpu.memory_space<vmem>>, vector<8x128xf32>
    tpu.vector_store %arg5[%c0_11, %c0_12], %12 {strides = array<i32>} : memref<8x128xf32, #tpu.memory_space<vmem>>, vector<8x128xf32>,
    %14 = tpu.iota {dimensions = array<i32: 1>} : vector<8x128xi32>
    %c2_i32 = arith.constant 2 : i32
    %15 = vector.broadcast %c2_i32 : i32 to vector<8x128xi32>
    %16 = arith.cmpi slt, %14, %15 : vector<8x128xi32>
    %cst_13 = arith.constant 0xFF800000 : f32
    %17 = vector.broadcast %cst_13 : f32 to vector<8x128xf32>
    %18 = arith.select %16, %12, %17 : vector<8x128xi1>, vector<8x128xf32>
    %cst_14 = arith.constant dense<0xFF800000> : vector<8xf32>
    %19 = vector.multi_reduction <maximumf>, %18, %cst_14 [1] : vector<8x128xf32> to vector<8xf32>
    %20 = vector.shape_cast %19 : vector<8xf32> to vector<8x1xf32>
    %21 = vector.broadcast %20 : vector<8x1xf32> to vector<8x128xf32>
    %22 = arith.cmpf oeq, %18, %21 : vector<8x128xf32>
    %23 = arith.andi %16, %22 : vector<8x128xi1>
    %c128_i32 = arith.constant 128 : i32
    %24 = vector.broadcast %c128_i32 : i32 to vector<8x128xi32>
    %25 = arith.select %23, %14, %24 : vector<8x128xi1>, vector<8x128xi32>
    %cst_15 = arith.constant dense<2147483647> : vector<8xi32>
    %26 = vector.multi_reduction <minsi>, %25, %cst_15 [1] : vector<8x128xi32> to vector<8xi32>
    %27 = vector.shape_cast %26 : vector<8xi32> to vector<8x1xi32>
    %c0_16 = arith.constant 0 : index
    %c0_17 = arith.constant 0 : index
    %28 = vector.load %arg6[%c0_16, %c0_17] : memref<8x1xi32, #tpu.memory_space<vmem>>, vector<8x1xi32>
    tpu.vector_store %arg6[%c0_16, %c0_17], %27 {strides = array<i32>} : memref<8x1xi32, #tpu.memory_space<vmem>>, vector<8x1xi32>,
    return
  }
}

</mosaic_0001>

<bundles_post_ra>
// kernel: qnet_forward.1
= control target key start
LH: loop header
LB: loop body
LE: loop exit
PB: predicated region body
PF: predicated region fallthrough
CT: control target
= control target key end

     0   :  { %12 = vsyncpa [#allocation3], 0  ;;  %s1582_s21 = smov [#allocation2]   ;;  %s2026_s0 = inlined_call_operand.vmem [shape: f32[8,4], index: 0, kind: input, shape index: {}]   ;;  %s2027_s1 = inlined_call_operand.vmem [shape: f32[4,128], index: 1, kind: input, shape index: {}]   ;;  %s2028_s2 = inlined_call_operand.vmem [shape: f32[1,128], index: 2, kind: input, shape index: {}]   ;;  %s2029_s3 = inlined_call_operand.hbm [shape: f32[128,128], index: 3, kind: input, shape index: {}]   ;;  %s2030_s4 = inlined_call_operand.vmem [shape: f32[1,128], index: 4, kind: input, shape index: {}]   ;;  %s2031_s5 = inlined_call_operand.vmem [shape: f32[8,128], index: 5, kind: output, shape index: {0}]   ;;  %s2032_s6 = inlined_call_operand.vmem [shape: s32[8,1], index: 6, kind: output, shape index: {1}]  }
   0x1   :  { %s24_s22 = sshll.u32 %s1582_s21, 4  ;;  %s25_s22 = int_to_ptr.vmem [resolvable:$true] %s24_s22 }
   0x2   :  { %s1568_s23 = scalar_lea.vmem %s25_s22, 2048  ;;  %p1573_p1 = scmp.lt.s32.totalorder %s25_s22, %s25_s22 }
   0x3   :  { %p1569_p0 = scmp.ne.s32.totalorder %s25_s22, %s1568_s23  ;;  %p1574_p2 = scmp.lt.s32.totalorder %s1568_s23, %s1568_s23 }
   0x5   :  { %p1575_p3 = por %p1574_p2, %p1573_p1 }
   0x7   :  { %p1576_p4 = pnand %p1575_p3, %p1569_p0 }
   0x9   :  { %1579 = shalt.err (!%p1576_p4)
}
   0xa   :  { %s1583_s24 = smov 128   ;;  %s1584_s25 = smov 8  }
   0xb   :  { %30 = dma.hbm_to_vmem [thread:$0]  %s2029_s3, 2048, %s25_s22, [#allocation3], %s1583_s24, %s1583_s24, %s1584_s25  }
   0xc   :  { %1580 = dma.done.wait [#allocation3], 2048  }
   0xd   :  { %1581 = vsyncadd [#allocation3], 4294965248  ;;  %v1585_v0 = vmov 0.0   ;;  %vm1586_vm0 = vmmov 0   ;;  %vm49_vm1 = vcmask 1043456   ;;  %vm45_vm2 = vcmask 31744  }
   0xe   :  { %1315 = vmatprep.subr.mxu0 %v1585_v0  ;;  %1317 = vmatprep.mubr.msk.f32.mxu0 %vm1586_vm0, %v1585_v0  ;;  %v37_v1 = vld [vmem:[%s2027_s1] sm:$0xf]  ;;  %v515_v3 = vld [vmem:[#allocation2 + $0x78] sm:$0xff]  ;;  %v514_v6 = vld [vmem:[#allocation2 + $0x70] sm:$0xff]  ;;  %vm1188_vm7 = vcmask 7168  }
   0xf   :  { %1320 = vmatprep.subr.mxu1 %v1585_v0  ;;  %1322 = vmatprep.mubr.msk.f32.mxu1 %vm1586_vm0, %v1585_v0  ;;  %v36_v2 = vld [vmem:[%s2026_s0] sm:$0xff]  ;;  %v51_v4 = vsel %vm49_vm1, %v37_v1, 0  ;;  %v1639_v9 = vand.u32 4294901760, %v515_v3  ;;  %v513_v10 = vld [vmem:[#allocation2 + $0x68] sm:$0xff]  ;;  %v1642_v13 = vand.u32 4294901760, %v514_v6  ;;  %v511_v19 = vld [vmem:[#allocation2 + $0x58] sm:$0xff] }
  0x10   :  { %v47_v5 = vsel %vm45_vm2, %v36_v2, 0  ;;  %v84_v7 = vand.u32 4294901760, %v51_v4  ;;  %v512_v14 = vld [vmem:[#allocation2 + $0x60] sm:$0xff]  ;;  %v1648_v18 = vand.u32 4294901760, %v513_v10  ;;  %v1655_v24 = vand.u32 4294901760, %v511_v19  ;;  %v510_v25 = vld [vmem:[#allocation2 + $0x50] sm:$0xff] }
  0x11   :  { %v1637_v8 = vand.u32 4294901760, %v47_v5  ;;  %v1646_v17 = vsub.f32 %v515_v3, %v1639_v9  ;;  %v1651_v22 = vsub.f32 %v514_v6, %v1642_v13  ;;  %v1653_v23 = vand.u32 4294901760, %v512_v14  ;;  %v509_v30 = vld [vmem:[#allocation2 + $0x48] sm:$0xff]  ;;  %v508_v34 = vld [vmem:[#allocation2 + $0x40] sm:$0xff]  ;;  %v507_v63 = vld [vmem:[#allocation2 + $0x38] sm:$0xff] }
  0x12   :  { %1316 = vmatpush3.msra.mxu0 %v84_v7  ;;  %v161_v12 = vsub.f32 %v51_v4, %v84_v7  ;;  %v1659_v29 = vsub.f32 %v513_v10, %v1648_v18  ;;  %v1665_v33 = vand.u32 4294901760, %v510_v25  ;;  %v1676_v37 = vsub.f32 %v511_v19, %v1655_v24  ;;  %v506_v2 = vld [vmem:[#allocation2 + $0x30] sm:$0xff]  ;;  %v504_v10 = vld [vmem:[#allocation2 + $0x20] sm:$0xff] }
  0x13   :  { %v120_v11 = vsub.f32 %v47_v5, %v1637_v8  ;;  %1325 = vmatprep.subr.mxu0 %v1585_v0  ;;  %v617_v28 = vand.u32 4294901760, %v1646_v17  ;;  %v624_v31 = vand.u32 4294901760, %v1651_v22  ;;  %v1663_v32 = vsub.f32 %v512_v14, %v1653_v23  ;;  %v505_v5 = vld [vmem:[#allocation2 + $0x28] sm:$0xff] }
  0x14   :  { %v162_v16 = vand.u32 4294901760, %v161_v12  ;;  %v631_v36 = vand.u32 4294901760, %v1659_v29  ;;  %v1678_v38 = vand.u32 4294901760, %v509_v30  ;;  %v1688_v41 = vsub.f32 %v510_v25, %v1665_v33 }
  0x15   :  { %v121_v15 = vand.u32 4294901760, %v120_v11  ;;  %v618_v35 = vsub.f32 %v1646_v17, %v617_v28  ;;  %v625_v39 = vsub.f32 %v1651_v22, %v624_v31  ;;  %v638_v40 = vand.u32 4294901760, %v1663_v32 }
  0x16   :  { %v163_v21 = vsub.f32 %v161_v12, %v162_v16  ;;  %v1690_v42 = vand.u32 4294901760, %v508_v34  ;;  %v632_v44 = vsub.f32 %v1659_v29, %v631_v36  ;;  %v645_v45 = vand.u32 4294901760, %v1676_v37 }
  0x17   :  { %v122_v20 = vsub.f32 %v120_v11, %v121_v15  ;;  %v619_v43 = vand.u32 4294901760, %v618_v35  ;;  %v1700_v46 = vsub.f32 %v509_v30, %v1678_v38  ;;  %v626_v47 = vand.u32 4294901760, %v625_v39 }
  0x18   :  { %v164_v27 = vand.u32 4294901760, %v163_v21  ;;  %v639_v48 = vsub.f32 %v1663_v32, %v638_v40  ;;  %v652_v49 = vand.u32 4294901760, %v1688_v41  ;;  %v1711_v50 = vsub.f32 %v508_v34, %v1690_v42 }
  0x19   :  { %v123_v26 = vand.u32 4294901760, %v122_v20  ;;  %v633_v51 = vand.u32 4294901760, %v632_v44  ;;  %v646_v52 = vsub.f32 %v1676_v37, %v645_v45  ;;  %v659_v53 = vand.u32 4294901760, %v1700_v46  ;;  %v501_v44 = vld [vmem:[#allocation2 + $0x8] sm:$0xff] }
  0x1a   :  { %1321 = vmatpush3.msra.mxu1 %v164_v27  ;;  %v640_v54 = vand.u32 4294901760, %v639_v48  ;;  %v653_v55 = vsub.f32 %v1688_v41, %v652_v49  ;;  %v666_v56 = vand.u32 4294901760, %v1711_v50  ;;  %v1757_v1 = vand.u32 4294901760, %v507_v63  ;;  %v502_v27 = vld [vmem:[#allocation2 + $0x10] sm:$0xff] }
  0x1b   :  { %1318 = vmatmul.mubr.f32.vlgmr.msra.gmra.mxu0 %v123_v26  ;;  %1323 = vmatmul.mubr.f32.vlgmr.msra.gmra.mxu1 %v1637_v8  ;;  %v647_v57 = vand.u32 4294901760, %v646_v52  ;;  %v660_v58 = vsub.f32 %v1700_v46, %v659_v53  ;;  %v1762_v4 = vand.u32 4294901760, %v506_v2  ;;  %v1800_v39 = vand.u32 4294901760, %v502_v27 }
  0x1c   :  { %1326 = vmatpush3.msra.mxu0 %v161_v12  ;;  %1330 = vmatprep.subr.mxu1 %v1585_v0  ;;  %v654_v59 = vand.u32 4294901760, %v653_v55  ;;  %v667_v60 = vsub.f32 %v1711_v50, %v666_v56  ;;  %v1760_v3 = vsub.f32 %v507_v63, %v1757_v1  ;;  %v1813_v52 = vand.u32 4294901760, %v501_v44  ;;  %v500_v55 = vld [vmem:[#allocation2] sm:$0xff] }
  0x1d   :  { %1327 = vmatprep.mubr.msk.f32.mxu0 %vm1586_vm0, %v1585_v0  ;;  %1331 = vmatpush3.msra.mxu1 %v84_v7  ;;  %v661_v61 = vand.u32 4294901760, %v660_v58 }
  0x1e   :  { %1335 = vmatprep.subr.mxu0 %v1585_v0  ;;  %1332 = vmatprep.mubr.msk.f32.mxu1 %vm1586_vm0, %v1585_v0  ;;  %v668_v62 = vand.u32 4294901760, %v667_v60  ;;  %v673_v6 = vand.u32 4294901760, %v1760_v3  ;;  %v1823_v60 = vand.u32 4294901760, %v500_v55 }
  0x1f   :  { %1328 = vmatmul.mubr.f32.vlgmr.msra.gmra.mxu0 %v120_v11  ;;  %1333 = vmatmul.mubr.f32.vlgmr.msra.gmra.mxu1 %v121_v15  ;;  %v1781_v15 = vand.u32 4294901760, %v504_v10 }
  0x20   :  { %1336 = vmatpush3.msra.mxu0 %v162_v16  ;;  %1340 = vmatprep.subr.mxu1 %v1585_v0  ;;  %v674_v11 = vsub.f32 %v1760_v3, %v673_v6  ;;  %v503_v16 = vld [vmem:[#allocation2 + $0x18] sm:$0xff] }
  0x21   :  { %1337 = vmatprep.mubr.msk.f32.mxu0 %vm1586_vm0, %v1585_v0  ;;  %1341 = vmatpush3.msra.mxu1 %v84_v7  ;;  %v1768_v7 = vsub.f32 %v506_v2, %v1762_v4  ;;  %v1790_v25 = vsub.f32 %v504_v10, %v1781_v15  ;;  %v1793_v26 = vand.u32 4294901760, %v503_v16  ;;  %v1836_v2 = vsub.f32 %v500_v55, %v1823_v60 }
  0x22   :  { %1342 = vmatprep.mubr.msk.f32.mxu1 %vm1586_vm0, %v1585_v0  ;;  %1380 = vmatprep.subr.mxu1 %v1585_v0  ;;  %v675_v19 = vand.u32 4294901760, %v674_v11 }
  0x23   :  { %1338 = vmatmul.mubr.f32.vlgmr.msra.gmra.mxu0 %v1637_v8  ;;  %1343 = vmatmul.mubr.f32.vlgmr.msra.gmra.mxu1 %v1637_v8  ;;  %v1770_v8 = vand.u32 4294901760, %v505_v5  ;;  %v680_v12 = vand.u32 4294901760, %v1768_v7  ;;  %v2037_v35 = vand.u32 4294901760, %v1790_v25 }
  0x24   :  { %1345 = vmatprep.subr.mxu0 %v1585_v0  ;;  %1381 = vmatpush3.msra.mxu1 %v619_v43  ;;  %v1804_v43 = vsub.f32 %v503_v16, %v1793_v26  ;;  %v2033_v16 = vand.u32 4294901760, %v1836_v2 }
  0x25   :  { %1346 = vmatpush3.msra.mxu0 %v1639_v9  ;;  %1382 = vmatprep.subr.mxu1 %v1585_v0  ;;  %v1779_v14 = vsub.f32 %v505_v5, %v1770_v8  ;;  %v681_v20 = vsub.f32 %v1768_v7, %v680_v12  ;;  %v695_v48 = vsub.f32 %v1790_v25, %v2037_v35 }
  0x26   :  { %1347 = vmatprep.subr.mxu0 %v1585_v0  ;;  %1383 = vmatpush3.msra.mxu1 %v626_v47 }
  0x27   :  { %1348 = vmatpush3.msra.mxu0 %v1642_v13  ;;  %1384 = vmatprep.subr.mxu1 %v1585_v0  ;;  %v2038_v21 = vand.u32 4294901760, %v1779_v14  ;;  %v682_v30 = vand.u32 4294901760, %v681_v20  ;;  %v723_v20 = vsub.f32 %v1836_v2, %v2033_v16 }
  0x28   :  { %1349 = vmatprep.subr.mxu0 %v1585_v0  ;;  %1385 = vmatpush3.msra.mxu1 %v633_v51  ;;  %v1811_v51 = vsub.f32 %v502_v27, %v1800_v39 }
  0x29   :  { %1350 = vmatpush3.msra.mxu0 %v1648_v18  ;;  %1386 = vmatprep.subr.mxu1 %v1585_v0  ;;  %v688_v34 = vsub.f32 %v1779_v14, %v2038_v21  ;;  %v724_v27 = vand.u32 4294901760, %v723_v20 }
  0x2a   :  { %1351 = vmatprep.subr.mxu0 %v1585_v0  ;;  %1387 = vmatpush3.msra.mxu1 %v640_v54  ;;  %v2036_v54 = vand.u32 4294901760, %v1804_v43  ;;  %v2035_v58 = vand.u32 4294901760, %v1811_v51 }
  0x2b   :  { %1352 = vmatpush3.msra.mxu0 %v1653_v23  ;;  %1388 = vmatprep.subr.mxu1 %v1585_v0  ;;  %v689_v47 = vand.u32 4294901760, %v688_v34 }
  0x2c   :  { %1353 = vmatprep.subr.mxu0 %v1585_v0  ;;  %1389 = vmatpush3.msra.mxu1 %v647_v57  ;;  %v696_v57 = vand.u32 4294901760, %v695_v48 }
  0x2d   :  { %1354 = vmatpush3.msra.mxu0 %v1655_v24  ;;  %1390 = vmatprep.subr.mxu1 %v1585_v0 }
  0x2e   :  { %1355 = vmatprep.subr.mxu0 %v1585_v0  ;;  %1391 = vmatpush3.msra.mxu1 %v654_v59  ;;  %v1821_v59 = vsub.f32 %v501_v44, %v1813_v52 }
  0x2f   :  { %1356 = vmatpush3.msra.mxu0 %v1665_v33  ;;  %1392 = vmatprep.subr.mxu1 %v1585_v0 }
  0x30   :  { %1357 = vmatprep.subr.mxu0 %v1585_v0  ;;  %1393 = vmatpush3.msra.mxu1 %v661_v61  ;;  %v702_v61 = vsub.f32 %v1804_v43, %v2036_v54  ;;  %v2034_v63 = vand.u32 4294901760, %v1821_v59 }
  0x31   :  { %1358 = vmatpush3.msra.mxu0 %v1678_v38  ;;  %1394 = vmatprep.subr.mxu1 %v1585_v0 }
  0x32   :  { %1359 = vmatprep.subr.mxu0 %v1585_v0  ;;  %1395 = vmatpush3.msra.mxu1 %v668_v62  ;;  %v709_v62 = vsub.f32 %v1811_v51, %v2035_v58  ;;  %v703_v5 = vand.u32 4294901760, %v702_v61  ;;  %v716_v11 = vsub.f32 %v1821_v59, %v2034_v63 }
  0x33   :  { %1360 = vmatpush3.msra.mxu0 %v1690_v42  ;;  %1396 = vmatprep.subr.mxu1 %v1585_v0 }
  0x34   :  { %1361 = vmatprep.subr.mxu0 %v1585_v0  ;;  %1412 = vmatprep.mubr.msk.f32.mxu1 %vm1586_vm0, %v1585_v0  ;;  %v710_v10 = vand.u32 4294901760, %v709_v62 }
  0x35   :  { %1377 = vmatprep.mubr.msk.f32.mxu0 %vm1586_vm0, %v1585_v0  ;;  %1362 = vmatpush3.msra.mxu0 %v1757_v1 }
  0x36   :  { %1363 = vmatprep.subr.mxu0 %v1585_v0  ;;  %1397 = vmatpush3.msra.mxu1 %v675_v19  ;;  %v717_v19 = vand.u32 4294901760, %v716_v11 }
  0x37   :  { %1364 = vmatpush3.msra.mxu0 %v1762_v4  ;;  %1398 = vmatprep.subr.mxu1 %v1585_v0 }
  0x38   :  { %1365 = vmatprep.subr.mxu0 %v1585_v0  ;;  %1399 = vmatpush3.msra.mxu1 %v682_v30  ;;  %v1199_v30 = vld [vmem:[%s2028_s2] ss:$0 sm:$0xff] }
  0x39   :  { %1366 = vmatpush3.msra.mxu0 %v1770_v8  ;;  %1400 = vmatprep.subr.mxu1 %v1585_v0 }
  0x3a   :  { %1367 = vmatprep.subr.mxu0 %v1585_v0  ;;  %1401 = vmatpush3.msra.mxu1 %v689_v47 }
  0x3b   :  { %1368 = vmatpush3.msra.mxu0 %v1781_v15  ;;  %1402 = vmatprep.subr.mxu1 %v1585_v0 }
  0x3c   :  { %1369 = vmatprep.subr.mxu0 %v1585_v0  ;;  %1403 = vmatpush3.msra.mxu1 %v696_v57 }
  0x3d   :  { %1370 = vmatpush3.msra.mxu0 %v1793_v26  ;;  %1404 = vmatprep.subr.mxu1 %v1585_v0 }
  0x3e   :  { %1371 = vmatprep.subr.mxu0 %v1585_v0  ;;  %1405 = vmatpush3.msra.mxu1 %v703_v5 }
  0x3f   :  { %1372 = vmatpush3.msra.mxu0 %v1800_v39  ;;  %1406 = vmatprep.subr.mxu1 %v1585_v0 }
  0x40   :  { %1373 = vmatprep.subr.mxu0 %v1585_v0  ;;  %1407 = vmatpush3.msra.mxu1 %v710_v10 }
  0x41   :  { %1374 = vmatpush3.msra.mxu0 %v1813_v52  ;;  %1408 = vmatprep.subr.mxu1 %v1585_v0 }
  0x42   :  { %1375 = vmatprep.subr.mxu0 %v1585_v0  ;;  %1409 = vmatpush3.msra.mxu1 %v717_v19 }
  0x43   :  { %1376 = vmatpush3.msra.mxu0 %v1823_v60  ;;  %1410 = vmatprep.subr.mxu1 %v1585_v0 }
  0x44   :  { %1415 = vmatprep.subr.mxu0 %v1585_v0  ;;  %1411 = vmatpush3.msra.mxu1 %v724_v27 }
  0x45   :  { %1450 = vmatprep.subr.mxu1 %v1585_v0 }
  0xdb   :  { %v125_v34 = vpop.f32.mrf.mxu0  ;;  %v201_v47 = vpop.f32.mrf.mxu1 }
  0xdc   :  { %v126_v44 = vadd.f32 %v1199_v30, %v125_v34 }
  0xdd   :  { %v1319_v48 = vpop.f32.mrf.mxu0  ;;  %v1324_v57 = vpop.f32.mrf.mxu1 }
  0xde   :  { %v202_v55 = vadd.f32 %v201_v47, %v126_v44 }
  0xdf   :  { %v275_v61 = vpop.f32.mrf.mxu0  ;;  %v349_v5 = vpop.f32.mrf.mxu1 }
  0xe0   :  { %v276_v62 = vadd.f32 %v275_v61, %v202_v55 }
  0xe1   :  { %v1329_v10 = vpop.f32.mrf.mxu0  ;;  %v1334_v19 = vpop.f32.mrf.mxu1 }
  0xe2   :  { %v350_v11 = vadd.f32 %v349_v5, %v276_v62 }
  0xe3   :  { %v423_v20 = vpop.f32.mrf.mxu0  ;;  %v495_v16 = vpop.f32.mrf.mxu1 }
  0xe4   :  { %v424_v27 = vadd.f32 %v423_v20, %v350_v11 }
  0xe5   :  { %v1339_v63 = vpop.f32.mrf.mxu0  ;;  %v1344_v54 = vpop.f32.mrf.mxu1 }
  0xe6   :  { %v496_v58 = vadd.f32 %v495_v16, %v424_v27 }
  0xe8   :  { %v499_v35 = vmax.f32 %v496_v58, 0.0 }
  0xea   :  { %v1856_v21 = vand.u32 4294901760, %v499_v35 }
  0xec   :  { %v1859_v30 = vsub.f32 %v499_v35, %v1856_v21  ;;  %1413 = vmatmul.mubr.f32.vlgmr.msra.gmra.mxu1 %v1856_v21 }
  0xed   :  { %1451 = vmatpush3.msra.mxu1 %v1639_v9  ;;  %1482 = vmatprep.mubr.msk.f32.mxu1 %vm1586_vm0, %v1585_v0 }
  0xee   :  { %v606_v34 = vand.u32 4294901760, %v1859_v30  ;;  %1452 = vmatprep.subr.mxu1 %v1585_v0 }
  0xef   :  { %1453 = vmatpush3.msra.mxu1 %v1642_v13 }
  0xf0   :  { %v607_v54 = vsub.f32 %v1859_v30, %v606_v34  ;;  %1454 = vmatprep.subr.mxu1 %v1585_v0 }
  0xf1   :  { %1455 = vmatpush3.msra.mxu1 %v1648_v18 }
  0xf2   :  { %1456 = vmatprep.subr.mxu1 %v1585_v0  ;;  %v608_v35 = vand.u32 4294901760, %v607_v54 }
  0xf3   :  { %1457 = vmatpush3.msra.mxu1 %v1653_v23 }
  0xf4   :  { %1458 = vmatprep.subr.mxu1 %v1585_v0  ;;  %1378 = vmatmul.mubr.f32.vlgmr.msra.gmra.mxu0 %v608_v35 }
  0xf5   :  { %1416 = vmatpush3.msra.mxu0 %v1646_v17  ;;  %1459 = vmatpush3.msra.mxu1 %v1655_v24  ;;  %v2041_v17 = vand.u32 4294901760, %v1804_v43 }
  0xf6   :  { %1417 = vmatprep.subr.mxu0 %v1585_v0  ;;  %1460 = vmatprep.subr.mxu1 %v1585_v0 }
  0xf7   :  { %1418 = vmatpush3.msra.mxu0 %v1651_v22  ;;  %1461 = vmatpush3.msra.mxu1 %v1665_v33  ;;  %v2043_v22 = vand.u32 4294901760, %v1821_v59 }
  0xf8   :  { %1419 = vmatprep.subr.mxu0 %v1585_v0  ;;  %1462 = vmatprep.subr.mxu1 %v1585_v0 }
  0xf9   :  { %1420 = vmatpush3.msra.mxu0 %v1659_v29  ;;  %1463 = vmatpush3.msra.mxu1 %v1678_v38 }
  0xfa   :  { %1421 = vmatprep.subr.mxu0 %v1585_v0  ;;  %1464 = vmatprep.subr.mxu1 %v1585_v0 }
  0xfb   :  { %1422 = vmatpush3.msra.mxu0 %v1663_v32  ;;  %1465 = vmatpush3.msra.mxu1 %v1690_v42 }
  0xfc   :  { %1423 = vmatprep.subr.mxu0 %v1585_v0  ;;  %1466 = vmatprep.subr.mxu1 %v1585_v0 }
  0xfd   :  { %1424 = vmatpush3.msra.mxu0 %v1676_v37  ;;  %1467 = vmatpush3.msra.mxu1 %v1757_v1 }
  0xfe   :  { %1425 = vmatprep.subr.mxu0 %v1585_v0  ;;  %1468 = vmatprep.subr.mxu1 %v1585_v0 }
  0xff   :  { %1426 = vmatpush3.msra.mxu0 %v1688_v41  ;;  %1469 = vmatpush3.msra.mxu1 %v1762_v4 }
 0x100   :  { %1427 = vmatprep.subr.mxu0 %v1585_v0  ;;  %1470 = vmatprep.subr.mxu1 %v1585_v0 }
 0x101   :  { %1428 = vmatpush3.msra.mxu0 %v1700_v46  ;;  %1471 = vmatpush3.msra.mxu1 %v1770_v8 }
 0x102   :  { %1429 = vmatprep.subr.mxu0 %v1585_v0  ;;  %1472 = vmatprep.subr.mxu1 %v1585_v0 }
 0x103   :  { %1430 = vmatpush3.msra.mxu0 %v1711_v50  ;;  %1473 = vmatpush3.msra.mxu1 %v1781_v15 }
 0x104   :  { %1431 = vmatprep.subr.mxu0 %v1585_v0  ;;  %1474 = vmatprep.subr.mxu1 %v1585_v0 }
 0x105   :  { %1432 = vmatpush3.msra.mxu0 %v1760_v3  ;;  %1475 = vmatpush3.msra.mxu1 %v1793_v26 }
 0x106   :  { %1433 = vmatprep.subr.mxu0 %v1585_v0  ;;  %1476 = vmatprep.subr.mxu1 %v1585_v0 }
 0x107   :  { %1434 = vmatpush3.msra.mxu0 %v1768_v7  ;;  %1477 = vmatpush3.msra.mxu1 %v1800_v39 }
 0x108   :  { %1435 = vmatprep.subr.mxu0 %v1585_v0  ;;  %1478 = vmatprep.subr.mxu1 %v1585_v0 }
 0x109   :  { %1436 = vmatpush3.msra.mxu0 %v1779_v14  ;;  %1479 = vmatpush3.msra.mxu1 %v1813_v52 }
 0x10a   :  { %1437 = vmatprep.subr.mxu0 %v1585_v0  ;;  %1480 = vmatprep.subr.mxu1 %v1585_v0 }
 0x10b   :  { %1438 = vmatpush3.msra.mxu0 %v1790_v25  ;;  %1481 = vmatpush3.msra.mxu1 %v1823_v60 }
 0x10c   :  { %1439 = vmatprep.subr.mxu0 %v1585_v0  ;;  %1483 = vmatmul.mubr.f32.vlgmr.msra.gmra.mxu1 %v606_v34 }
 0x10d   :  { %1520 = vmatprep.subr.mxu1 %v1585_v0  ;;  %1440 = vmatpush3.msra.mxu0 %v1804_v43 }
 0x10e   :  { %1521 = vmatpush3.msra.mxu1 %v1639_v9  ;;  %1441 = vmatprep.subr.mxu0 %v1585_v0  ;;  %v2039_v9 = vand.u32 4294901760, %v1779_v14 }
 0x10f   :  { %1522 = vmatprep.subr.mxu1 %v1585_v0  ;;  %1442 = vmatpush3.msra.mxu0 %v1811_v51 }
 0x110   :  { %1523 = vmatpush3.msra.mxu1 %v1642_v13  ;;  %1443 = vmatprep.subr.mxu0 %v1585_v0  ;;  %v2040_v13 = vand.u32 4294901760, %v1790_v25 }
 0x111   :  { %1524 = vmatprep.subr.mxu1 %v1585_v0  ;;  %1444 = vmatpush3.msra.mxu0 %v1821_v59 }
 0x112   :  { %1525 = vmatpush3.msra.mxu1 %v1648_v18  ;;  %1445 = vmatprep.subr.mxu0 %v1585_v0  ;;  %v2042_v18 = vand.u32 4294901760, %v1811_v51 }
 0x113   :  { %1526 = vmatprep.subr.mxu1 %v1585_v0  ;;  %1446 = vmatpush3.msra.mxu0 %v1836_v2 }
 0x114   :  { %1447 = vmatprep.mubr.msk.f32.mxu0 %vm1586_vm0, %v1585_v0  ;;  %1527 = vmatpush3.msra.mxu1 %v1653_v23  ;;  %v2044_v23 = vand.u32 4294901760, %v1836_v2 }
 0x115   :  { %1448 = vmatmul.mubr.f32.vlgmr.msra.gmra.mxu0 %v1859_v30  ;;  %1485 = vmatprep.subr.mxu0 %v1585_v0 }
 0x116   :  { %1528 = vmatprep.subr.mxu1 %v1585_v0  ;;  %1486 = vmatpush3.msra.mxu0 %v617_v28 }
 0x117   :  { %1529 = vmatpush3.msra.mxu1 %v1655_v24  ;;  %1487 = vmatprep.subr.mxu0 %v1585_v0 }
 0x118   :  { %1530 = vmatprep.subr.mxu1 %v1585_v0  ;;  %1488 = vmatpush3.msra.mxu0 %v624_v31 }
 0x119   :  { %1531 = vmatpush3.msra.mxu1 %v1665_v33  ;;  %1489 = vmatprep.subr.mxu0 %v1585_v0 }
 0x11a   :  { %1532 = vmatprep.subr.mxu1 %v1585_v0  ;;  %1490 = vmatpush3.msra.mxu0 %v631_v36 }
 0x11b   :  { %1533 = vmatpush3.msra.mxu1 %v1678_v38  ;;  %1491 = vmatprep.subr.mxu0 %v1585_v0  ;;  %v1200_v38 = vld [vmem:[%s2030_s4] ss:$0 sm:$0xff] }
 0x11c   :  { %1534 = vmatprep.subr.mxu1 %v1585_v0  ;;  %1492 = vmatpush3.msra.mxu0 %v638_v40 }
 0x11d   :  { %1535 = vmatpush3.msra.mxu1 %v1690_v42  ;;  %1493 = vmatprep.subr.mxu0 %v1585_v0 }
 0x11e   :  { %1536 = vmatprep.subr.mxu1 %v1585_v0  ;;  %1494 = vmatpush3.msra.mxu0 %v645_v45  ;;  %v1165_v45 = vlaneseq }
 0x11f   :  { %1537 = vmatpush3.msra.mxu1 %v1757_v1  ;;  %1495 = vmatprep.subr.mxu0 %v1585_v0 }
 0x120   :  { %1538 = vmatprep.subr.mxu1 %v1585_v0  ;;  %1496 = vmatpush3.msra.mxu0 %v652_v49  ;;  %v1166_v49 = vand.u32 127, %v1165_v45 }
 0x121   :  { %1539 = vmatpush3.msra.mxu1 %v1762_v4  ;;  %1497 = vmatprep.subr.mxu0 %v1585_v0 }
 0x122   :  { %1540 = vmatprep.subr.mxu1 %v1585_v0  ;;  %1498 = vmatpush3.msra.mxu0 %v659_v53  ;;  %vm1167_vm3 = vcmp.lt.s32.totalorder %v1166_v49, 2 }
 0x123   :  { %1541 = vmatpush3.msra.mxu1 %v1770_v8  ;;  %1499 = vmatprep.subr.mxu0 %v1585_v0 }
 0x124   :  { %1542 = vmatprep.subr.mxu1 %v1585_v0  ;;  %1500 = vmatpush3.msra.mxu0 %v666_v56 }
 0x125   :  { %1543 = vmatpush3.msra.mxu1 %v1781_v15  ;;  %1501 = vmatprep.subr.mxu0 %v1585_v0 }
 0x126   :  { %1544 = vmatprep.subr.mxu1 %v1585_v0  ;;  %1502 = vmatpush3.msra.mxu0 %v673_v6 }
 0x127   :  { %1545 = vmatpush3.msra.mxu1 %v1793_v26  ;;  %1503 = vmatprep.subr.mxu0 %v1585_v0 }
 0x128   :  { %1546 = vmatprep.subr.mxu1 %v1585_v0  ;;  %1504 = vmatpush3.msra.mxu0 %v680_v12 }
 0x129   :  { %1547 = vmatpush3.msra.mxu1 %v1800_v39  ;;  %1505 = vmatprep.subr.mxu0 %v1585_v0 }
 0x12a   :  { %1548 = vmatprep.subr.mxu1 %v1585_v0  ;;  %1506 = vmatpush3.msra.mxu0 %v2039_v9 }
 0x12b   :  { %1549 = vmatpush3.msra.mxu1 %v1813_v52  ;;  %1507 = vmatprep.subr.mxu0 %v1585_v0 }
 0x12c   :  { %1550 = vmatprep.subr.mxu1 %v1585_v0  ;;  %1508 = vmatpush3.msra.mxu0 %v2040_v13 }
 0x12d   :  { %1551 = vmatpush3.msra.mxu1 %v1823_v60  ;;  %1552 = vmatprep.mubr.msk.f32.mxu1 %vm1586_vm0, %v1585_v0 }
 0x12e   :  { %1509 = vmatprep.subr.mxu0 %v1585_v0  ;;  %1553 = vmatmul.mubr.f32.vlgmr.msra.gmra.mxu1 %v1856_v21 }
 0x12f   :  { %1510 = vmatpush3.msra.mxu0 %v2041_v17  ;;  %1517 = vmatprep.mubr.msk.f32.mxu0 %vm1586_vm0, %v1585_v0 }
 0x130   :  { %1511 = vmatprep.subr.mxu0 %v1585_v0 }
 0x131   :  { %1512 = vmatpush3.msra.mxu0 %v2042_v18 }
 0x132   :  { %1513 = vmatprep.subr.mxu0 %v1585_v0 }
 0x133   :  { %1514 = vmatpush3.msra.mxu0 %v2043_v22 }
 0x134   :  { %1515 = vmatprep.subr.mxu0 %v1585_v0 }
 0x135   :  { %1516 = vmatpush3.msra.mxu0 %v2044_v23 }
 0x136   :  { %1518 = vmatmul.mubr.f32.vlgmr.msra.gmra.mxu0 %v1856_v21 }
 0x1ac   :  { %v761_v24 = vpop.f32.mrf.mxu1 }
 0x1ae   :  { %v1414_v28 = vpop.f32.mrf.mxu1 }
 0x1b4   :  { %v610_v29 = vpop.f32.mrf.mxu0 }
 0x1b5   :  { %v611_v40 = vadd.f32 %v1200_v38, %v610_v29 }
 0x1b6   :  { %v1379_v31 = vpop.f32.mrf.mxu0 }
 0x1b7   :  { %v762_v0 = vadd.f32 %v761_v24, %v611_v40 }
 0x1cc   :  { %v954_v32 = vpop.f32.mrf.mxu1 }
 0x1ce   :  { %v1484_v33 = vpop.f32.mrf.mxu1 }
 0x1d5   :  { %v865_v36 = vpop.f32.mrf.mxu0 }
 0x1d6   :  { %v866_v46 = vadd.f32 %v865_v36, %v762_v0 }
 0x1d7   :  { %v1449_v37 = vpop.f32.mrf.mxu0 }
 0x1d8   :  { %v955_v50 = vadd.f32 %v954_v32, %v866_v46 }
 0x1ee   :  { %v1160_v41 = vpop.f32.mrf.mxu1 }
 0x1f0   :  { %v1554_v42 = vpop.f32.mrf.mxu1 }
 0x1f6   :  { %v1073_v53 = vpop.f32.mrf.mxu0 }
 0x1f7   :  { %v1074_v56 = vadd.f32 %v1073_v53, %v955_v50 }
 0x1f8   :  { %v1519_v1 = vpop.f32.mrf.mxu0 }
 0x1f9   :  { %v1161_v3 = vadd.f32 %v1160_v41, %v1074_v56 }
 0x1fb   :  { %v1168_v4 = vsel %vm1167_vm3, %v1161_v3, -inf  ;;  %1164 = vst [vmem:[%s2031_s5] sm:$0xff] %v1161_v3 }
 0x1fc   :  { %1169 = vmax.xlane.f32.xlu0 %v1168_v4 }
 0x285   :  { %v1170_v6 = vpop.xlane.xlu0 %1169 }
 0x286   :  { %vm1171_vm4 = vcmp.eq.f32.partialorder %v1168_v4, %v1170_v6 }
 0x287   :  { %vm1172_vm5 = vmand %vm1167_vm3, %vm1171_vm4 }
 0x288   :  { %v1173_v7 = vsel %vm1172_vm5, %v1166_v49, 128 }
 0x289   :  { %v1175_v8 = vshra.s32 %v1173_v7, 16  ;;  %v1174_v14 = vand.u32 65535, %v1173_v7 }
 0x28b   :  { %v1177_v12 = vcvt.s32.f32 %v1175_v8  ;;  %v1176_v21 = vcvt.s32.f32 %v1174_v14 }
 0x28d   :  { %1178 = vmin.xlane.f32.xlu0 %v1177_v12 }
 0x316   :  { %v1179_v15 = vpop.xlane.xlu0 %1178 }
 0x317   :  { %vm1180_vm6 = vcmp.eq.f32.partialorder %v1177_v12, %v1179_v15  ;;  %v1185_v26 = vcvt.f32.s32 %v1179_v15 }
 0x318   :  { %v1181_v25 = vsel %vm1180_vm6, %v1176_v21, inf }
 0x319   :  { %1182 = vmin.xlane.f32.xlu1 %v1181_v25  ;;  %v1186_v43 = vshll.u32 %v1185_v26, 16 }
 0x3a2   :  { %v1183_v39 = vpop.xlane.xlu1 %1182 }
 0x3a3   :  { %v1184_v51 = vcvt.f32.s32 %v1183_v39 }
 0x3a5   :  { %v1187_v52 = vadd.s32 %v1186_v43, %v1184_v51 }
 0x3a7   :  { %1189 = vst.msk [vmem:[%s2032_s6] sm:$0xff] %vm1188_vm7, %v1187_v52 }
 0x3a8   :  { %1198 = vsyncpa [#allocation3], 1 }

</bundles_post_ra>
